<compile_context>
chip_gen: v5e
topology: v5e:2x2
jax: 0.10.0
libtpu: 0.0.40
codegen_flags: <defaults>
</compile_context>

<pallas_src>
import functools

import jax
import jax.numpy as jnp
from jax.experimental import pallas as pl
from jax.experimental.pallas import tpu as pltpu

EPS = 0.2  # smoothing factor from the PyTorch module


def _round_up(x, m):
    return ((x + m - 1) // m) * m


def _ce_smooth_kernel(preds_ref, labels_ref, out_ref, *, n_valid, tile_rows, eps):
    x = preds_ref[...].astype(jnp.float32)          # (tm, C), f32 compute on VPU
    tm, c = x.shape

    b = eps / (c - 1)                               # weight on non-target classes
    a = (1.0 - eps) - b                             # extra weight on target class
    # smoothed target t_j = a*onehot_j + b, and sum_j t_j == 1.

    # Mask rows beyond the true N. The last grid block may be ragged (no wrapper
    # pad), so zero x for invalid rows *before* the LSE so garbage can't make Inf.
    row0 = pl.program_id(0) * tile_rows
    row_idx = row0 + jax.lax.broadcasted_iota(jnp.int32, (tm, 1), 0)
    valid = row_idx < n_valid                       # (tm, 1) bool
    x = jnp.where(valid, x, 0.0)

    # Numerically stable log-sum-exp per row.
    m = jnp.max(x, axis=-1, keepdims=True)          # (tm, 1)
    lse = jnp.log(jnp.sum(jnp.exp(x - m), axis=-1, keepdims=True)) + m

    # Fused weighted reduction: sum_j t_j * x_j in a single lane reduce.
    labels = labels_ref[...]                        # (tm, 1) int32
    col = jax.lax.broadcasted_iota(jnp.int32, x.shape, 1)
    w = jnp.where(col == labels, a + b, b)          # == t_j
    tx = jnp.sum(w * x, axis=-1, keepdims=True)     # (tm, 1)

    # loss_row = -(sum_j t_j (x_j - lse)) = lse - sum_j t_j x_j   (since sum t_j = 1)
    row_loss = jnp.where(valid, lse - tx, 0.0)

    # Per-tile partial sum, written as a lane-dense (1, 8, 128) block.
    partial = jnp.sum(row_loss)
    out_ref[...] = jnp.full(out_ref.shape, partial, dtype=out_ref.dtype)


def _choose_tiling(n, c, itemsize):
    """Returns (tile_rows, vmem_limit_bytes), sized for the running TPU generation."""
    try:
        vmem_cap = int(pltpu.get_tpu_info().vmem_capacity_bytes)
    except Exception:
        vmem_cap = 128 * 1024 * 1024

    if vmem_cap <= 64 * 1024 * 1024:                # v7x-class: 64 MiB per TC
        footprint_budget = 20 * 1024 * 1024
        vmem_limit = 28 * 1024 * 1024
    else:                                           # v5e/v6e: 128 MiB
        footprint_budget = 32 * 1024 * 1024
        vmem_limit = 48 * 1024 * 1024

    # Live VMEM per row: double-buffered native input block + ~4 f32/int32
    # [tm, C] temporaries inside the kernel (x_f32, exp, iota, weighted copy).
    per_row = c * (2 * itemsize + 4 * 4)
    tr = footprint_budget // max(1, per_row)

    # Never larger than the (8-aligned) problem, and keep >= ~4 row tiles so a
    # "parallel" grid can shard across both v7x TensorCores.
    tr = min(tr, _round_up(n, 8), _round_up(pl.cdiv(n, 4), 8))
    tr = max(8, (tr // 8) * 8)                      # multiple of 8 sublanes
    return int(tr), int(vmem_limit)


def cross_entropy_loss_smooth(preds, gts, *, tile_rows=None, eps=EPS):
    """preds: [N, C] logits (any float dtype); gts: [N] int labels. Returns scalar f32."""
    N, C = preds.shape
    itemsize = jnp.dtype(preds.dtype).itemsize
    auto_tr, vmem_limit = _choose_tiling(N, C, itemsize)
    if tile_rows is None:
        tile_rows = auto_tr
    else:
        assert tile_rows % 8 == 0, "tile_rows must be a multiple of 8"

    num_tiles = pl.cdiv(N, tile_rows)               # ragged last tile handled in-kernel

    labels = gts.reshape(-1).astype(jnp.int32).reshape(N, 1)

    kernel = functools.partial(
        _ce_smooth_kernel, n_valid=N, tile_rows=tile_rows, eps=float(eps)
    )

    partials = pl.pallas_call(
        kernel,
        out_shape=jax.ShapeDtypeStruct((num_tiles, 8, 128), jnp.float32),
        grid_spec=pltpu.PrefetchScalarGridSpec(
            num_scalar_prefetch=0,
            grid=(num_tiles,),
            in_specs=[
                pl.BlockSpec((tile_rows, C), lambda i: (i, 0)),   # logits (native dtype)
                pl.BlockSpec((tile_rows, 1), lambda i: (i, 0)),   # labels
            ],
            out_specs=pl.BlockSpec((1, 8, 128), lambda i: (i, 0, 0)),
        ),
        compiler_params=pltpu.CompilerParams(
            dimension_semantics=("parallel",),       # independent tiles -> megacore OK
            vmem_limit_bytes=vmem_limit,             # generation-aware scoped limit
        ),
    )(preds, labels)

    return jnp.sum(partials[:, 0, 0]) / jnp.float32(N)


def _reference(preds, gts, eps=EPS):
    # pure-JAX reference matching the PyTorch forward (smoothing=True)
    N, C = preds.shape
    one_hot = jax.nn.one_hot(gts, C, dtype=jnp.float32)
    target = one_hot * (1.0 - eps) + (1.0 - one_hot) * (eps / (C - 1))
    log_prb = jax.nn.log_softmax(preds.astype(jnp.float32), axis=1)
    return -(target * log_prb).sum(axis=1).mean()


if __name__ == "__main__":
    key = jax.random.PRNGKey(0)
    k1, k2, k3, k4, k5, k6 = jax.random.split(key, 6)

    # Case 1: auto tiling (multi-tile "parallel" grid), f32 logits, N % tile == 0.
    N, C = 64, 16
    preds = jax.random.normal(k1, (N, C), dtype=jnp.float32)
    gts = jax.random.randint(k2, (N,), 0, C, dtype=jnp.int32)

    loss = cross_entropy_loss_smooth(preds, gts)
    loss = jax.block_until_ready(loss)
    ref = _reference(preds, gts)
    assert jnp.allclose(loss, ref, atol=2e-5, rtol=1e-5), (loss, ref)

    # Case 2: N not a multiple of the tile -> exercises the ragged last block
    # (no wrapper pad) with in-kernel zero/mask, forced small tile.
    N2, C2 = 20, 16
    preds2 = jax.random.normal(k3, (N2, C2), dtype=jnp.float32)
    gts2 = jax.random.randint(k4, (N2,), 0, C2, dtype=jnp.int32)

    loss2 = cross_entropy_loss_smooth(preds2, gts2, tile_rows=8)
    loss2 = jax.block_until_ready(loss2)
    ref2 = _reference(preds2, gts2)
    assert jnp.allclose(loss2, ref2, atol=2e-5, rtol=1e-5), (loss2, ref2)

    # Case 3: bf16 logits streamed in their native dtype (f32 compute in-kernel),
    # ragged last tile again.
    N3, C3 = 24, 32
    preds3 = jax.random.normal(k5, (N3, C3), dtype=jnp.float32).astype(jnp.bfloat16)
    gts3 = jax.random.randint(k6, (N3,), 0, C3, dtype=jnp.int32)

    loss3 = cross_entropy_loss_smooth(preds3, gts3, tile_rows=16)
    loss3 = jax.block_until_ready(loss3)
    ref3 = _reference(preds3, gts3)   # reference upcasts the same bf16 values
    assert jnp.allclose(loss3, ref3, atol=1e-4, rtol=1e-4), (loss3, ref3)

    print("KERNEL_OK")
</pallas_src>

<mosaic_0001>
module attributes {stable_mosaic.version = 11 : i64} {
  func.func @_ce_smooth_kernel(%arg0: i32, %arg1: memref<16x16xf32, #tpu.memory_space<vmem>>, %arg2: memref<16x1xi32, #tpu.memory_space<vmem>>, %arg3: memref<1x8x128xf32, #tpu.memory_space<vmem>>) attributes {dimension_semantics = [#tpu.dimension_semantics<parallel>], iteration_bounds = array<i64: 4>, scalar_prefetch = 0 : i64, scratch_operands = 0 : i64, tpu.core_type = #tpu.core_type<tc>, window_params = [{transform_indices = @transform_0, window_bounds = array<i64: 16, 16>}, {transform_indices = @transform_1, window_bounds = array<i64: 16, 1>}, {transform_indices = @transform_2, window_bounds = array<i64: 1, 8, 128>}]} {
    %c0 = arith.constant 0 : index
    %c0_0 = arith.constant 0 : index
    %0 = vector.load %arg1[%c0, %c0_0] : memref<16x16xf32, #tpu.memory_space<vmem>>, vector<16x16xf32>
    %c16_i32 = arith.constant 16 : i32
    %1 = arith.muli %arg0, %c16_i32 : i32
    %2 = tpu.iota {dimensions = array<i32: 0>} : vector<16x1xi32>
    %3 = vector.broadcast %1 : i32 to vector<16x1xi32>
    %4 = arith.addi %3, %2 : vector<16x1xi32>
    %c64_i32 = arith.constant 64 : i32
    %5 = vector.broadcast %c64_i32 : i32 to vector<16x1xi32>
    %6 = arith.cmpi slt, %4, %5 : vector<16x1xi32>
    %cst = arith.constant 0.000000e+00 : f32
    %7 = vector.shape_cast %6 : vector<16x1xi1> to vector<16x1xi1>
    %8 = vector.broadcast %7 : vector<16x1xi1> to vector<16x16xi1>
    %9 = vector.broadcast %cst : f32 to vector<16x16xf32>
    %10 = arith.select %8, %0, %9 : vector<16x16xi1>, vector<16x16xf32>
    %cst_1 = arith.constant dense<0xFF800000> : vector<16xf32>
    %11 = vector.multi_reduction <maximumf>, %10, %cst_1 [1] : vector<16x16xf32> to vector<16xf32>
    %12 = vector.shape_cast %11 : vector<16xf32> to vector<16x1xf32>
    %13 = vector.broadcast %12 : vector<16x1xf32> to vector<16x16xf32>
    %14 = arith.subf %10, %13 : vector<16x16xf32>
    %15 = math.exp %14 : vector<16x16xf32>
    %cst_2 = arith.constant dense<0.000000e+00> : vector<16xf32>
    %16 = vector.multi_reduction <add>, %15, %cst_2 [1] : vector<16x16xf32> to vector<16xf32>
    %17 = vector.shape_cast %16 : vector<16xf32> to vector<16x1xf32>
    %18 = math.log %17 : vector<16x1xf32>
    %19 = arith.addf %18, %12 : vector<16x1xf32>
    %c0_3 = arith.constant 0 : index
    %c0_4 = arith.constant 0 : index
    %20 = vector.load %arg2[%c0_3, %c0_4] : memref<16x1xi32, #tpu.memory_space<vmem>>, vector<16x1xi32>
    %21 = tpu.iota {dimensions = array<i32: 1>} : vector<16x16xi32>
    %22 = vector.broadcast %20 : vector<16x1xi32> to vector<16x16xi32>
    %23 = arith.cmpi eq, %21, %22 : vector<16x16xi32>
    %cst_5 = arith.constant 8.000000e-01 : f32
    %cst_6 = arith.constant 0.0133333337 : f32
    %24 = vector.broadcast %cst_5 : f32 to vector<16x16xf32>
    %25 = vector.broadcast %cst_6 : f32 to vector<16x16xf32>
    %26 = arith.select %23, %24, %25 : vector<16x16xi1>, vector<16x16xf32>
    %27 = arith.mulf %26, %10 : vector<16x16xf32>
    %cst_7 = arith.constant dense<0.000000e+00> : vector<16xf32>
    %28 = vector.multi_reduction <add>, %27, %cst_7 [1] : vector<16x16xf32> to vector<16xf32>
    %29 = vector.shape_cast %28 : vector<16xf32> to vector<16x1xf32>
    %30 = arith.subf %19, %29 : vector<16x1xf32>
    %cst_8 = arith.constant 0.000000e+00 : f32
    %31 = vector.broadcast %cst_8 : f32 to vector<16x1xf32>
    %32 = arith.select %6, %30, %31 : vector<16x1xi1>, vector<16x1xf32>
    %33 = vector.shape_cast %32 : vector<16x1xf32> to vector<1x16x1xf32>
    %cst_9 = arith.constant dense<0.000000e+00> : vector<1xf32>
    %34 = vector.multi_reduction <add>, %33, %cst_9 [1, 2] : vector<1x16x1xf32> to vector<1xf32>
    %35 = vector.shape_cast %34 : vector<1xf32> to vector<1x1x1xf32>
    %36 = vector.extract %35[0, 0, 0] : f32 from vector<1x1x1xf32>
    %37 = vector.broadcast %36 : f32 to vector<1x8x128xf32>
    %c0_10 = arith.constant 0 : index
    %c0_11 = arith.constant 0 : index
    %c0_12 = arith.constant 0 : index
    %38 = vector.load %arg3[%c0_10, %c0_11, %c0_12] : memref<1x8x128xf32, #tpu.memory_space<vmem>>, vector<1x8x128xf32>
    tpu.vector_store %arg3[%c0_10, %c0_11, %c0_12], %37 {strides = array<i32>} : memref<1x8x128xf32, #tpu.memory_space<vmem>>, vector<1x8x128xf32>,
    return
  }
  func.func @transform_0(%arg0: i32) -> (i32, i32) {
    %c0_i32 = arith.constant 0 : i32
    %c0_i32_0 = arith.constant 0 : i32
    return %arg0, %c0_i32 : i32, i32
  }
  func.func @transform_1(%arg0: i32) -> (i32, i32) {
    %c0_i32 = arith.constant 0 : i32
    %c0_i32_0 = arith.constant 0 : i32
    return %arg0, %c0_i32 : i32, i32
  }
  func.func @transform_2(%arg0: i32) -> (i32, i32, i32) {
    %c0_i32 = arith.constant 0 : i32
    %c0_i32_0 = arith.constant 0 : i32
    %c0_i32_1 = arith.constant 0 : i32
    return %arg0, %c0_i32, %c0_i32_0 : i32, i32, i32
  }
}

</mosaic_0001>

<bundles_post_ra>
// kernel: tpu_custom_call.1
= control target key start
LH: loop header
LB: loop body
LE: loop exit
PB: predicated region body
PF: predicated region fallthrough
CT: control target
= control target key end

     0   :  { %7 = vsyncpa [#allocation3], 0  ;;  %s587_s0 = inlined_call_operand.vmem [shape: f32[64,16], index: 0, kind: input, shape index: {}]   ;;  %s588_s1 = inlined_call_operand.vmem [shape: s32[64,1], index: 1, kind: input, shape index: {}]   ;;  %s589_s2 = inlined_call_operand.hbm [shape: f32[4,8,128], index: 2, kind: output, shape index: {}]  }
   0x1   :  { %9 = vsyncpa [#allocation3 + $0x1], 0  ;;  %s484_s9 = smov 0   ;;  %s486_s10 = smov 0  }
   0x2   :  { %s488_s11 = smov 0   ;;  %s490_s12 = smov 0  }
   0x3 LB: > { %s505_s13 = sadd.s32 4294967295, %s465_s12   ;;  %s336_s14 = sadd.s32 4294967294, %s465_s12   ;;  %s465_s12 = sphi %s490_s12, %s595_s12   ;;  %s461_s11 = sphi %s488_s11, %s594_s11   ;;  %s457_s10 = sphi %s486_s10, %s593_s10   ;;  %s453_s9 = sphi %s484_s9, %s592_s9  }
   0x4   : > { %s509_s15 = sadd.s32 1, %s465_s12   ;;  %s74_s16 = sadd.s32 1, %s461_s11 }
   0x5   : > { %s71_s17 = ssub.s32 %s465_s12, %s509_s15  ;;  %p84_p0 = scmp.ne.s32.totalorder %s461_s11, %s457_s10 }
   0x6   : > { %p72_p1 = scmp.eq.s32.totalorder %s71_s17, 0  ;;  %p85_p2 = scmp.eq.s32.totalorder %s505_s13, 3 }
   0x7   : > { %p90_p3 = scmp.ne.s32.totalorder %s457_s10, %s453_s9  ;;  %p91_p4 = scmp.eq.s32.totalorder %s336_s14, 3 }
   0x8   : > { %s520_s18 = scalar_select %p72_p1, %s461_s11, %s74_s16  }
   0x9   : > { %p522_p5 = por %p85_p2, %p84_p0  ;;  %p526_p6 = por %p91_p4, %p90_p3 }
   0xa   : > { %p339_p7 = scmp.ge.s32.totalorder %s465_s12, 1  ;;  %p127_p8 = scmp.lt.s32.totalorder %s465_s12, 5 }
   0xc   : > { %p128_p9 = pnand %p339_p7, %p127_p8 }
   0xd   : > { %s341_s21 = sshll.u32 (!%p128_p9), %s505_s13, 1  ;;  %s345_s22 = sshll.u32 (!%p128_p9), %s505_s13, 4 }
   0xe   : > { %131 = sbr.rel (%p128_p9) target bundleno = 479 (0x1df), region = 28  ;;  %p155_p10 = scmp.lt.s32.totalorder (!%p128_p9), %s341_s21, 7 }
   0xf   : > { %s151_s30 = sand.u32 (!%p128_p9), 1, %s457_s10   ;;  %s347_s4 = sshll.u32 (!%p128_p9), %s505_s13, 3 }
  0x10   : > { %s340_s3 = sshll.u32 (!%p128_p9), %s151_s30, 3  ;;  %s260_s7 = scalar_lea.hbm (!%p128_p9), %s589_s2, %s347_s4 }
  0x11   : > { %s153_s8 = scalar_lea.vmem (!%p128_p9), [#allocation2], %s340_s3  ;;  %s264_s16 = sshll.u32 (!%p128_p9), %s260_s7, 4  ;;  %s265_s16 = int_to_ptr.hbm [resolvable:$true] %s264_s16 }
  0x12   : > { %s262_s14 = sshll.u32 (!%p128_p9), %s153_s8, 4  ;;  %s423_s25 = scalar_lea.hbm (!%p128_p9), %s589_s2, 32  ;;  %s263_s14 = int_to_ptr.vmem [resolvable:$true] %s262_s14 }
  0x13   : > { %v169_v0 = vlaneseq  ;;  %v172_v1 = vstv %s345_s22  ;;  %v467_v2 = vmov 0   ;;  %s597_s21 = smov (!%p155_p10, %s341_s21), 7  ;;  %vm183_vm1 = vcmask 130048   ;;  %s417_s22 = sshra.s32 %s265_s16, 4  ;;  %s418_s22 = int_to_ptr.hbm [resolvable:$true] %s417_s22 }
  0x14   : > { %393 = vset.pattern.permute.xlu1 %v467_v2  ;;  %394 = vset.pattern.permute.xlu0 %v467_v2  ;;  %s342_s23 = sshll.u32 %s597_s21, 3  ;;  %v468_v17 = vmov 0.013333334   ;;  %vm234_vm5 = vcmask 7168   ;;  %s250_s21 = scalar_lea.sflag [#allocation3], %s151_s30 }
  0x15   : > { %v170_v3 = vshrl.u32 %v169_v0, 7  ;;  %s158_s26 = scalar_lea.vmem %s587_s0, %s342_s23  ;;  %s164_s29 = scalar_lea.vmem %s588_s1, %s342_s23  ;;  %v211_v15 = vand.u32 127, %v169_v0 }
  0x16   : > { %v166_v7 = vld [vmem:[%s158_s26] sm:$0xff]  ;;  %v167_v11 = vld [vmem:[%s158_s26 + $0x8] sm:$0xff]  ;;  %s419_s23 = scalar_lea.hbm %s418_s22, 8  ;;  %p424_p0 = scmp.lt.s32.totalorder %s418_s22, %s589_s2 }
  0x17   : > { %v534_v4 = vadd.s32 %v172_v1, %v170_v3  ;;  %v171_v5 = vadd.s32 8, %v170_v3  ;;  %v208_v8 = vld [vmem:[%s164_s29] sm:$0xff]  ;;  %v209_v13 = vld [vmem:[%s164_s29 + $0x8] sm:$0xff]  ;;  %p420_p11 = scmp.ne.s32.totalorder %s418_s22, %s419_s23  ;;  %p425_p1 = scmp.lt.s32.totalorder %s423_s25, %s419_s23 }
  0x18   : > { %213 = vperm.xlu1 %393, %v208_v8  }
  0x19   : > { %vm175_vm0 = vcmp.lt.s32.totalorder %v534_v4, 64  ;;  %v174_v6 = vadd.s32 %v172_v1, %v171_v5  ;;  %p421_p12 = pnand %p420_p11, %p522_p5  ;;  %p426_p2 = por %p425_p1, %p424_p0 }
  0x1a   : > { %v181_v9 = vsel %vm175_vm0, %v166_v7, 0.0 }
  0x1b   : > { %v184_v10 = vsel %vm183_vm1, %v181_v9, -inf  ;;  %vm176_vm2 = vcmp.lt.s32.totalorder %v174_v6, 64  ;;  %p422_p13 = pneg %p421_p12 }
  0x1c   : > { %185 = vmax.xlane.f32.xlu0 %v184_v10  ;;  %v182_v12 = vsel %vm176_vm2, %v167_v11, 0.0 }
  0x1d   : > { %v187_v14 = vsel %vm183_vm1, %v182_v12, -inf  ;;  %p427_p3 = pnand %p426_p2, %p422_p13 }
  0x20   : > { %216 = vperm.xlu1 %393, %v209_v13  }
  0x24   : > { %188 = vmax.xlane.f32.xlu0 %v187_v14 }
  0x8a   : > { %v214_v16 = vpop.permute.xlu1 %213 }
  0x8b   : > { %vm218_vm3 = vcmp.eq.s32.totalorder %v211_v15, %v214_v16 }
  0x8c   : > { %v220_v18 = vsel %vm218_vm3, 0.8, %v468_v17 }
  0x8d   : > { %v222_v20 = vmul.f32 %v220_v18, %v181_v9 }
  0x8f   : > { %v186_v19 = vpop.xlane.xlu0 %185  ;;  %v224_v22 = vsel %vm183_vm1, %v222_v20, 0.0 }
  0x90   : > { %v190_v21 = vsub.f32 %v181_v9, %v186_v19  ;;  %225 = vadd.xlane.f32.xlu0 %v224_v22 }
  0x92   : > { %v192_v23 = vmul.f32 1.442695, %v190_v21  ;;  %v217_v24 = vpop.permute.xlu1 %216 }
  0x93   : > { %vm219_vm4 = vcmp.eq.s32.totalorder %v211_v15, %v217_v24 }
  0x94   : > { %395 = vpow2.f32 %v192_v23  ;;  %v221_v25 = vsel %vm219_vm4, 0.8, %v468_v17 }
  0x95   : > { %v223_v27 = vmul.f32 %v221_v25, %v182_v12 }
  0x97   : > { %v189_v26 = vpop.xlane.xlu0 %188  ;;  %v227_v29 = vsel %vm183_vm1, %v223_v27, 0.0 }
  0x98   : > { %v191_v28 = vsub.f32 %v182_v12, %v189_v26  ;;  %228 = vadd.xlane.f32.xlu1 %v227_v29 }
  0x9a   : > { %v396_v30 = vpop.eup %395  ;;  %v194_v31 = vmul.f32 1.442695, %v191_v28 }
  0x9b   : > { %v196_v32 = vsel %vm183_vm1, %v396_v30, 0.0 }
  0x9c   : > { %397 = vpow2.f32 %v194_v31  ;;  %197 = vadd.xlane.f32.xlu2 %v196_v32 }
  0xa2   : > { %v398_v33 = vpop.eup %397 }
  0xa3   : > { %v199_v34 = vsel %vm183_vm1, %v398_v33, 0.0 }
  0xa4   : > { %200 = vadd.xlane.f32.xlu2 %v199_v34 }
 0x103   : > { %v226_v40 = vpop.xlane.xlu0 %225 }
 0x10b   : > { %v229_v45 = vpop.xlane.xlu1 %228 }
 0x10f   : > { %v198_v35 = vpop.xlane.xlu2 %197 }
 0x110   : > { %399 = vlog2.f32 %v198_v35 }
 0x116   : > { %v400_v36 = vpop.eup %399 }
 0x117   : > { %v203_v37 = vmul.f32 0.6931472, %v400_v36  ;;  %v201_v38 = vpop.xlane.xlu2 %200 }
 0x118   : > { %401 = vlog2.f32 %v201_v38 }
 0x119   : > { %v206_v39 = vadd.f32 %v203_v37, %v186_v19 }
 0x11b   : > { %v230_v43 = vsub.f32 %v206_v39, %v226_v40 }
 0x11d   : > { %v232_v47 = vsel %vm175_vm0, %v230_v43, 0.0 }
 0x11e   : > { %v402_v41 = vpop.eup %401  ;;  %v235_v49 = vsel %vm234_vm5, %v232_v47, 0.0 }
 0x11f   : > { %v205_v42 = vmul.f32 0.6931472, %v402_v41 }
 0x121   : > { %v207_v44 = vadd.f32 %v205_v42, %v189_v26 }
 0x123   : > { %v231_v46 = vsub.f32 %v207_v44, %v229_v45 }
 0x125   : > { %v233_v48 = vsel %vm176_vm2, %v231_v46, 0.0 }
 0x126   : > { %v236_v50 = vsel %vm234_vm5, %v233_v48, 0.0 }
 0x127   : > { %v237_v51 = vadd.f32 %v236_v50, %v235_v49 }
 0x129   : > { %238 = vadd.xlane.f32.xlu2 %v237_v51 }
 0x19c   : > { %v239_v52 = vpop.xlane.xlu2 %238 }
 0x19d   : > { %v240_v53 = vrot.slane %v239_v52, 4 }
 0x19f   : > { %v241_v54 = vadd.f32 %v240_v53, %v239_v52 }
 0x1a1   : > { %v242_v55 = vrot.slane %v241_v54, 2 }
 0x1a3   : > { %v243_v56 = vadd.f32 %v242_v55, %v241_v54 }
 0x1a5   : > { %v244_v57 = vrot.slane %v243_v56, 1 }
 0x1a7   : > { %v245_v58 = vadd.f32 %v244_v57, %v243_v56 }
 0x1a9   : > { %350 = vpush %v245_v58 }
 0x1da   : > { %s351_s17 = spop %350 }
 0x1db   : > { %v247_v59 = vstv %s351_s17 }
 0x1dc   : > { %248 = vst [vmem:[%s153_s8] sm:$0xff] %v247_v59 }
 0x1dd   : > { %430 = shalt.err (!%p427_p3)
}
 0x1de   : > { %352 = dma.vmem_to_hbm [thread:$0]  (%p522_p5), %s263_s14, 128, %s265_s16, %s250_s21  }
 0x1df PF: > { %p358_p4 = scmp.ge.s32.totalorder %s465_s12, 2  ;;  %s276_s28 = sand.u32 1, %s453_s9  }
 0x1e0   : > { %s277_s29 = scalar_lea.sflag [#allocation3], %s276_s28 }
 0x1e1   : > { %p355_p7 = pnand %p358_p4, %p526_p6 }
 0x1e3   : > { %p356_p8 = pneg %p355_p7 }
 0x1e5   : > { %448 = dma.done.wait (%p356_p8), %s277_s29, 128  }
 0x1e6   : > { %450 = vsyncadd (%p356_p8), %s277_s29, 4294967168  ;;  %p12_p9 = scmp.ge.s32.totalorder %s509_s15, 6   ;;  %s592_s9 = smov %s457_s10 }
 0x1e7   : > { %s593_s10 = smov %s461_s11  ;;  %s594_s11 = smov %s520_s18 }
 0x1e8   : > { %s595_s12 = smov %s509_s15  ;;  %14 = sbr.rel (!%p12_p9) target bundleno = 3 (0x3), region = 66 }
 0x1ed   :  { %283 = vsyncpa [#allocation3], 1 }
 0x1ee   :  { %285 = vsyncpa [#allocation3 + $0x1], 1 }

</bundles_post_ra>
